<compile_context>
chip_gen: v7x
topology: tpu7x:2x2x1
jax: 0.10.0
libtpu: 0.0.40
codegen_flags: <defaults>
</compile_context>

<pallas_src>
import math
from functools import partial

import numpy as np
import jax
import jax.numpy as jnp
from jax import lax
from jax.experimental import pallas as pl
from jax.experimental.pallas import tpu as pltpu


def build_pe_table(max_len: int, d_model: int) -> jnp.ndarray:
    """Sinusoidal table identical to the torch __init__ math.

    Torch stores (max_len, 1, d_model); we keep (max_len, d_model) and broadcast
    over batch inside the kernel / wrapper.
    """
    position = np.arange(0, max_len, dtype=np.float32)[:, None]
    div_term = np.exp(
        np.arange(0, d_model, 2, dtype=np.float32) * (-math.log(10000.0) / d_model)
    )
    pe = np.zeros((max_len, d_model), dtype=np.float32)
    pe[:, 0::2] = np.sin(position * div_term)
    pe[:, 1::2] = np.cos(position * div_term)
    return jnp.asarray(pe)


def _fmix32(v):
    """Single-round 32-bit avalanche finalizer (lowbias32). Pure VPU int ops."""
    v = v ^ (v >> 16)
    v = v * jnp.uint32(0x7FEB352D)
    v = v ^ (v >> 15)
    v = v * jnp.uint32(0x846CA68B)
    v = v ^ (v >> 16)
    return v


def _keep_mask(shape, row0, col0, full_width, seed_u, thresh):
    """keep <=> hash(flat_index ^ mixed_seed) >= round(p * 2^32)."""
    row = row0 + lax.broadcasted_iota(jnp.int32, shape, 0)
    col = col0 + lax.broadcasted_iota(jnp.int32, shape, 1)
    ctr = (row * full_width + col).astype(jnp.uint32)
    return _fmix32(ctr ^ seed_u) >= thresh


def _pe_dropout_kernel(seed_ref, x_ref, pe_ref, o_ref, *,
                       p: float, training: bool, batch: int, d_model: int,
                       tile_s: int, pe_matches_x: bool, compute_dtype):
    cdt = compute_dtype
    apply_dropout = bool(training) and p > 0.0

    if apply_dropout:
        thresh = jnp.uint32(min(int(round(p * (2.0 ** 32))), 2 ** 32 - 1))
        inv_keep = jnp.asarray(1.0 / (1.0 - p), dtype=cdt)
        # Scalar-only seed mixing (negligible; keeps the per-element hash to one round).
        seed_u = (seed_ref[0].astype(jnp.uint32) * jnp.uint32(0x9E3779B9)
                  + jnp.uint32(0x85EBCA6B))
        row0 = pl.program_id(0) * tile_s
        full_w = o_ref.shape[-1] if pe_matches_x else batch * d_model

    def add_pe_and_drop(x_tile, pe_tile, col0):
        y = x_tile.astype(cdt) + pe_tile
        if apply_dropout:
            # Inverted dropout (torch.nn.Dropout train-mode semantics).
            # TODO(synk): torch's dropout RNG stream cannot be reproduced bit-exactly;
            # a deterministic counter-hash PRNG is used instead.
            keep = _keep_mask(y.shape, row0, col0, full_w, seed_u, thresh)
            y = jnp.where(keep, y * inv_keep, jnp.zeros_like(y))
        return y.astype(o_ref.dtype)

    pe = pe_ref[...].astype(cdt)

    if pe_matches_x:
        # PE was batch-replicated (and lane-padded) in the wrapper: plain add.
        o_ref[...] = add_pe_and_drop(x_ref[...], pe, 0)
    else:
        # d_model % 128 == 0: process one lane-aligned D-wide batch chunk at a
        # time.  No replicated PE is materialised in VMEM; every load/store is
        # a full, unmasked (8,128)-aligned access.
        for b in range(batch):
            sl = slice(b * d_model, (b + 1) * d_model)
            o_ref[:, sl] = add_pe_and_drop(x_ref[:, sl], pe, b * d_model)


def _pick_tile_s(S: int, x_row_bytes: int, *, target_bytes: int = 4 << 20,
                 min_rows: int = 512, min_grid: int = 4) -> int:
    """~4 MiB x-blocks, >=512 rows when rows are cheap, grid >= 4 when S allows."""
    rows = max(min_rows, target_bytes // max(x_row_bytes, 1))
    cap = (S + min_grid - 1) // min_grid          # keep >= min_grid steps (v7x: 2 TCs x 2)
    cap = max(8, ((cap + 7) // 8) * 8)
    rows = min(rows, cap, S)
    if rows >= S:
        return S
    return max(8, (rows // 8) * 8)


def positional_encoding_forward(x, pe_table, *, p=0.1, training=True, seed=0,
                                tile_s=None):
    """x: (S, B, D). Returns dropout(x + pe[:S]) like the torch module forward."""
    S, B, D = x.shape
    max_len, pe_d = pe_table.shape
    assert max_len >= S and pe_d == D
    BD = B * D

    # bf16 I/O -> bf16 math (native VALU on v6e/v7x; halves intermediate VMEM).
    # TODO(synk): on v5e (no bf16 VALU) f32 compute would be preferable even for bf16 I/O.
    compute_dtype = jnp.bfloat16 if x.dtype == jnp.bfloat16 else jnp.float32

    # Lane-dense view: fold batch into the lane axis (contiguous reshape, free).
    x2 = x.reshape(S, BD)

    chunked = (D % 128 == 0)                      # lane-aligned production path
    if chunked:
        W = BD                                    # automatically a multiple of 128
        pe_w = D
        pe_full = pe_table.astype(compute_dtype)  # full table; rows picked by BlockSpec
    else:
        # Small / unaligned d_model: pad the folded lane axis to a multiple of
        # 128 (unmasked vst) and batch-replicate PE once in the wrapper (S rows
        # only) so the kernel is a plain elementwise add with no in-kernel copy.
        W = ((BD + 127) // 128) * 128
        pad = W - BD
        if pad:
            x2 = jnp.pad(x2, ((0, 0), (0, pad)))
        pe_rep = jnp.tile(pe_table[:S].astype(compute_dtype), (1, B))
        if pad:
            pe_rep = jnp.pad(pe_rep, ((0, 0), (0, pad)))
        pe_w = W
        pe_full = pe_rep

    x_item = x2.dtype.itemsize
    if tile_s is None:
        tile_s = _pick_tile_s(S, W * x_item)
    tile_s = min(tile_s, S)
    if tile_s != S:
        tile_s = max(8, (tile_s // 8) * 8)

    # VMEM footprint: double-buffered x/out/pe blocks plus in-kernel compute /
    # i32 temporaries.  Keep it comfortably inside v7x's 64 MiB physical VMEM.
    comp_item = max(jnp.dtype(compute_dtype).itemsize, 4)
    pe_item = pe_full.dtype.itemsize

    def _vmem_budget(ts):
        io = ts * W * x_item * 2                  # x block + out block
        peb = ts * pe_w * pe_item
        interm = 4 * ts * W * comp_item           # f32/i32 temporaries (rough bound)
        return 2 * (io + peb) + interm            # default double-buffered pipeline

    while _vmem_budget(tile_s) > (44 << 20) and tile_s > 8:
        tile_s = max(8, ((tile_s // 2) // 8) * 8)

    vmem_limit = int(min(48 << 20, max(16 << 20, _vmem_budget(tile_s) + (2 << 20))))

    # PE block sublane dim must be a multiple of 8 or the full extent.
    if chunked and tile_s % 8 != 0:
        pe_in = pe_full[:S]                        # tile_s == S here (single block)
    else:
        pe_in = pe_full

    grid = pl.cdiv(S, tile_s)
    seed_arr = jnp.asarray([seed], dtype=jnp.int32)
    kernel = partial(_pe_dropout_kernel, p=float(p), training=bool(training),
                     batch=B, d_model=D, tile_s=tile_s,
                     pe_matches_x=not chunked, compute_dtype=compute_dtype)

    out2 = pl.pallas_call(
        kernel,
        out_shape=jax.ShapeDtypeStruct((S, W), x.dtype),
        grid_spec=pltpu.PrefetchScalarGridSpec(
            num_scalar_prefetch=1,                 # seed lands in SMEM
            grid=(grid,),
            in_specs=[
                pl.BlockSpec((tile_s, W), lambda i, seed: (i, 0)),     # x (folded)
                pl.BlockSpec((tile_s, pe_w), lambda i, seed: (i, 0)),  # pe
            ],
            out_specs=pl.BlockSpec((tile_s, W), lambda i, seed: (i, 0)),
        ),
        compiler_params=pltpu.CompilerParams(
            dimension_semantics=("parallel",),     # independent steps (v7x 2 TCs)
            vmem_limit_bytes=vmem_limit,
        ),
    )(seed_arr, x2, pe_in)

    if W != BD:
        out2 = out2[:, :BD]
    return out2.reshape(S, B, D)


if __name__ == "__main__":
    # Small shapes consistent with the module: seq=8, batch=2, d_model=32.
    S, B, D = 8, 2, 32
    MAX_LEN = 250
    P_DROP = 0.1

    key = jax.random.PRNGKey(0)
    x = jax.random.normal(key, (S, B, D), dtype=jnp.float32)

    pe_table = build_pe_table(MAX_LEN, D)

    # Eval-mode run (dropout = identity) — check against pure-JAX reference.
    out_eval = positional_encoding_forward(x, pe_table, p=P_DROP, training=False)
    out_eval = jax.block_until_ready(out_eval)
    ref = x + pe_table[:S][:, None, :]
    np.testing.assert_allclose(np.asarray(out_eval), np.asarray(ref),
                               rtol=1e-6, atol=1e-6)

    # Train-mode run (dropout active, deterministic in-kernel hash PRNG).
    out_train = positional_encoding_forward(x, pe_table, p=P_DROP, training=True,
                                            seed=0)
    out_train = jax.block_until_ready(out_train)
    assert out_train.shape == (S, B, D)

    # Every element must be either dropped (0) or scaled by 1/(1-p).
    y = np.asarray(out_train)
    base = np.asarray(ref) / (1.0 - P_DROP)
    ok = np.isclose(y, 0.0, atol=1e-6) | np.isclose(y, base, rtol=1e-5, atol=1e-6)
    assert ok.all(), "dropout output is not {0, (x+pe)/(1-p)}"
    # Loose sanity bound on the drop rate.
    drop_frac = float(np.mean(np.isclose(y, 0.0, atol=1e-6)
                              & ~np.isclose(base, 0.0, atol=1e-6)))
    assert drop_frac < 0.5, f"implausible drop fraction {drop_frac}"

    print("KERNEL_OK")
</pallas_src>

<mosaic_0001>
module attributes {stable_mosaic.version = 11 : i64} {
  func.func @_pe_dropout_kernel(%arg0: i32, %arg1: memref<1xi32, #tpu.memory_space<smem>>, %arg2: memref<8x128xf32, #tpu.memory_space<vmem>>, %arg3: memref<8x128xf32, #tpu.memory_space<vmem>>, %arg4: memref<8x128xf32, #tpu.memory_space<vmem>>) attributes {dimension_semantics = [#tpu.dimension_semantics<parallel>], iteration_bounds = array<i64: 1>, scalar_prefetch = 1 : i64, scratch_operands = 0 : i64, tpu.core_type = #tpu.core_type<tc>, window_params = [{transform_indices = @transform_0, window_bounds = array<i64: 8, 128>}, {transform_indices = @transform_1, window_bounds = array<i64: 8, 128>}, {transform_indices = @transform_2, window_bounds = array<i64: 8, 128>}]} {
    %c0 = arith.constant 0 : index
    %c0_0 = arith.constant 0 : index
    %0 = vector.load %arg3[%c0, %c0_0] : memref<8x128xf32, #tpu.memory_space<vmem>>, vector<8x128xf32>
    %c0_1 = arith.constant 0 : index
    %c0_2 = arith.constant 0 : index
    %1 = vector.load %arg2[%c0_1, %c0_2] : memref<8x128xf32, #tpu.memory_space<vmem>>, vector<8x128xf32>
    %2 = arith.addf %1, %0 : vector<8x128xf32>
    %c0_3 = arith.constant 0 : index
    %c0_4 = arith.constant 0 : index
    %3 = vector.load %arg4[%c0_3, %c0_4] : memref<8x128xf32, #tpu.memory_space<vmem>>, vector<8x128xf32>
    tpu.vector_store %arg4[%c0_3, %c0_4], %2 {strides = array<i32>} : memref<8x128xf32, #tpu.memory_space<vmem>>, vector<8x128xf32>,
    return
  }
  func.func @transform_0(%arg0: i32, %arg1: memref<1xi32, #tpu.memory_space<smem>>) -> (i32, i32) {
    %c0_i32 = arith.constant 0 : i32
    %c0_i32_0 = arith.constant 0 : i32
    return %arg0, %c0_i32 : i32, i32
  }
  func.func @transform_1(%arg0: i32, %arg1: memref<1xi32, #tpu.memory_space<smem>>) -> (i32, i32) {
    %c0_i32 = arith.constant 0 : i32
    %c0_i32_0 = arith.constant 0 : i32
    return %arg0, %c0_i32 : i32, i32
  }
  func.func @transform_2(%arg0: i32, %arg1: memref<1xi32, #tpu.memory_space<smem>>) -> (i32, i32) {
    %c0_i32 = arith.constant 0 : i32
    %c0_i32_0 = arith.constant 0 : i32
    return %arg0, %c0_i32 : i32, i32
  }
}

</mosaic_0001>

<bundles_post_ra>
// kernel: tpu_custom_call.1
= control target key start
LH: loop header
LB: loop body
LE: loop exit
PB: predicated region body
PF: predicated region fallthrough
CT: control target
= control target key end

     0   :  { %9 = vsyncpa [#allocation5], 0  ;;  %s192_s0 = inlined_call_operand.<no memory space> [shape: s32[1], index: 0, kind: input, shape index: {}]   ;;  %s193_s1 = inlined_call_operand.hbm [shape: f32[8,128], index: 1, kind: input, shape index: {}]   ;;  %s194_s2 = inlined_call_operand.hbm [shape: f32[8,128], index: 2, kind: input, shape index: {}]   ;;  %s195_s3 = inlined_call_operand.hbm [shape: f32[8,128], index: 3, kind: output, shape index: {}]  }
   0x1   :  { %10 = vsyncpa [#allocation8], 0 }
   0x2   :  { %11 = vsyncpa [#allocation6], 0  ;;  %s133_s12 = smov [#allocation4]   ;;  %s134_s14 = smov [#allocation7]  }
   0x3   :  { %s18_s13 = sshll.u32 %s133_s12, 4  ;;  %s28_s15 = sshll.u32 %s134_s14, 4  ;;  %s19_s13 = int_to_ptr.vmem [resolvable:$true] %s18_s13  ;;  %s29_s15 = int_to_ptr.vmem [resolvable:$true] %s28_s15 }
   0x4   :  { %s61_s17 = scalar_lea.hbm %s193_s1, 128 }
   0x5   :  { %p62_p0 = scmp.ne.s32.totalorder %s193_s1, %s61_s17  ;;  %p65_p1 = scmp.lt.u32.totalorder %s61_s17, %s193_s1 }
   0x7   :  { %p67_p2 = pnand %p65_p1, %p62_p0 }
   0x9   :  { %70 = shalt.err (!%p67_p2)
}
   0xa   :  { %s71_s22 = scalar_lea.vmem %s19_s13, 128  ;;  %p76_p4 = scmp.lt.s32.totalorder %s19_s13, %s19_s13 }
   0xb   :  { %p72_p3 = scmp.ne.s32.totalorder %s19_s13, %s71_s22  ;;  %p77_p5 = scmp.lt.s32.totalorder %s71_s22, %s71_s22 }
   0xd   :  { %p78_p6 = por %p77_p5, %p76_p4 }
   0xf   :  { %p79_p7 = pnand %p78_p6, %p72_p3 }
  0x11   :  { %82 = shalt.err (!%p79_p7)
}
  0x12   :  { %21 = dma.hbm_to_vmem [thread:$0]  %s193_s1, 128, %s19_s13, [#allocation5]  }
  0x13   :  { %s83_s27 = scalar_lea.hbm %s194_s2, 128 }
  0x14   :  { %p84_p8 = scmp.ne.s32.totalorder %s194_s2, %s83_s27  ;;  %p87_p9 = scmp.lt.u32.totalorder %s83_s27, %s194_s2 }
  0x16   :  { %p89_p10 = pnand %p87_p9, %p84_p8 }
  0x18   :  { %92 = shalt.err (!%p89_p10)
}
  0x19   :  { %s93_s5 = scalar_lea.vmem %s29_s15, 128  ;;  %p98_p12 = scmp.lt.s32.totalorder %s29_s15, %s29_s15 }
  0x1a   :  { %p94_p11 = scmp.ne.s32.totalorder %s29_s15, %s93_s5  ;;  %p99_p13 = scmp.lt.s32.totalorder %s93_s5, %s93_s5 }
  0x1c   :  { %p100_p0 = por %p99_p13, %p98_p12 }
  0x1e   :  { %p101_p1 = pnand %p100_p0, %p94_p11 }
  0x20   :  { %104 = shalt.err (!%p101_p1)
}
  0x21   :  { %31 = dma.hbm_to_vmem [thread:$0]  %s194_s2, 128, %s29_s15, [#allocation8]  }
  0x22   :  { %127 = dma.done.wait [#allocation5], 128  }
  0x23   :  { %128 = vsyncadd [#allocation5], 4294967168 }
  0x24   :  { %129 = dma.done.wait [#allocation8], 128  }
  0x25   :  { %130 = vsyncadd [#allocation8], 4294967168  ;;  %s135_s7 = smov [#allocation9]   ;;  %v38_v0 = vld [vmem:[#allocation7] sm:$0xff]  ;;  %v39_v1 = vld [vmem:[#allocation4] sm:$0xff] }
  0x26   :  { %s48_s8 = sshll.u32 %s135_s7, 4  ;;  %v40_v2 = vadd.f32 %v39_v1, %v38_v0  ;;  %s49_s8 = int_to_ptr.vmem [resolvable:$true] %s48_s8 }
  0x27   :  { %s105_s9 = scalar_lea.vmem %s49_s8, 128  ;;  %p110_p3 = scmp.lt.s32.totalorder %s49_s8, %s49_s8 }
  0x28   :  { %41 = vst [vmem:[#allocation9] sm:$0xff] %v40_v2  ;;  %p106_p2 = scmp.ne.s32.totalorder %s49_s8, %s105_s9  ;;  %p111_p4 = scmp.lt.s32.totalorder %s105_s9, %s105_s9 }
  0x2a   :  { %p112_p5 = por %p111_p4, %p110_p3 }
  0x2c   :  { %p113_p6 = pnand %p112_p5, %p106_p2 }
  0x2e   :  { %116 = shalt.err (!%p113_p6)
}
  0x2f   :  { %s117_s11 = scalar_lea.hbm %s195_s3, 128 }
  0x30   :  { %p118_p7 = scmp.ne.s32.totalorder %s195_s3, %s117_s11  ;;  %p121_p8 = scmp.lt.u32.totalorder %s117_s11, %s195_s3 }
  0x32   :  { %p123_p9 = pnand %p121_p8, %p118_p7 }
  0x34   :  { %126 = shalt.err (!%p123_p9)
}
  0x35   :  { %51 = dma.vmem_to_hbm [thread:$0]  %s49_s8, 128, %s195_s3, [#allocation6]  }
  0x36   :  { %131 = dma.done.wait [#allocation6], 128  }
  0x37   :  { %132 = vsyncadd [#allocation6], 4294967168 }
  0x38   :  { %55 = vsyncpa [#allocation5], 1 }
  0x39   :  { %56 = vsyncpa [#allocation8], 1 }
  0x3a   :  { %57 = vsyncpa [#allocation6], 1 }

</bundles_post_ra>
